<compile_context>
chip_gen: v5e
topology: v5e:2x2
jax: 0.10.0
libtpu: 0.0.40
codegen_flags: <defaults>
</compile_context>

<pallas_src>
import functools
import math

import jax
import jax.numpy as jnp
from jax.experimental import pallas as pl
from jax.experimental.pallas import tpu as pltpu


# ----------------------------------------------------------------------------
# Pallas kernel: one (B, TK) tile of the negative logits.
# ----------------------------------------------------------------------------
def _lneg_kernel(bias_ref, q_ref, mem_ref, out_ref, *, inv_t, use_softmax):
    # bias_ref: (1,)    f32 in SMEM:  -ln(Z) for the NCE path (0.0 before Z set)
    # q_ref:    (B, D)  bf16, resident across the whole grid
    # mem_ref:  (TK, D) bf16, one double-buffered tile of the queue
    # out_ref:  (B, TK) f32, lane-dense output tile
    logits = jax.lax.dot_general(
        q_ref[...], mem_ref[...],
        dimension_numbers=(((1,), (1,)), ((), ())),   # contract D with D, no .T
        preferred_element_type=jnp.float32)           # f32 accumulation on MXU
    if use_softmax:
        out_ref[...] = logits * inv_t
    else:
        # exp(x/T) / Z == exp(x/T - ln Z): one VPU mul-add feeding the EUP exp,
        # saves a whole extra HBM pass over the slab.
        out_ref[...] = jnp.exp(logits * inv_t + bias_ref[0])


def _pick_tk(K, desired):
    """Largest multiple of 128 that divides K and is <= min(desired, K)."""
    tk = min(desired, K)
    for cand in range(tk, 127, -128):
        if K % cand == 0:
            return cand
    # Fallback: single full-extent tile (block == full dim is always legal).
    return K


def _round_up(x, m):
    return -(-x // m) * m


def moco_l_neg(q_bf16, memory_bf16, *, temperature, use_softmax, bias,
               tk_desired=4096):
    """l_neg slab (B, K) in f32:
         use_softmax=True  -> (q @ memory^T) / T
         use_softmax=False -> exp((q @ memory^T) / T + bias)   (bias = -ln Z)
    """
    B, D = q_bf16.shape
    K, D2 = memory_bf16.shape
    assert D == D2

    # Pad B to the f32 sublane granularity (8) so output stores are unmasked.
    # (Padding to 16 would also align the bf16 q sublane packing; B is tiny.)
    B_pad = _round_up(B, 8)
    if B_pad != B:
        q_bf16 = jnp.pad(q_bf16, ((0, B_pad - B), (0, 0)))

    # Big K tiles: >=1 MiB of bf16 bank per DMA when K allows it; always a
    # multiple of 128 lanes (unmasked vst) and divides K (no padded tiles).
    tk = _pick_tk(K, tk_desired)

    bias_arr = jnp.asarray(bias, jnp.float32).reshape((1,))
    kernel = functools.partial(
        _lneg_kernel, inv_t=1.0 / float(temperature), use_softmax=use_softmax)

    out = pl.pallas_call(
        kernel,
        out_shape=jax.ShapeDtypeStruct((B_pad, K), jnp.float32),
        grid=(K // tk,),
        in_specs=[
            pl.BlockSpec(memory_space=pltpu.MemorySpace.SMEM),  # -ln(Z) scalar
            pl.BlockSpec((B_pad, D), lambda i: (0, 0)),   # q: resident in VMEM
            pl.BlockSpec((tk, D), lambda i: (i, 0)),      # memory: streamed
        ],
        out_specs=pl.BlockSpec((B_pad, tk), lambda i: (0, i)),  # lane-dense
        compiler_params=pltpu.CompilerParams(
            dimension_semantics=("parallel",),  # K tiles independent (megacore)
            vmem_limit_bytes=32 * 1024 * 1024,  # safe on v5e/v6e/v7x, fits tk<=8192
        ),
    )(bias_arr, q_bf16, memory_bf16)

    if B_pad != B:
        out = out[:B]
    return out


# ----------------------------------------------------------------------------
# Fused, jitted forward epilogues (single XLA pass over the slab).
# ----------------------------------------------------------------------------
@functools.partial(jax.jit, static_argnames=("temperature",))
def _forward_nce(q, k, memory, bias, *, temperature):
    l_pos = jnp.sum(q * k, axis=1, keepdims=True)                       # (B, 1)
    l_neg = moco_l_neg(q.astype(jnp.bfloat16), memory,
                       temperature=temperature, use_softmax=False, bias=bias)
    pos = jnp.exp(l_pos / temperature + bias)
    # TODO(synk): returning (pos, l_neg) separately would remove this extra
    # HBM pass; kept to match the original module's (B, 1+K) output.
    return jnp.concatenate([pos, l_neg], axis=1)


@functools.partial(jax.jit, static_argnames=("temperature",))
def _forward_softmax(q, k, memory, *, temperature):
    l_pos = jnp.sum(q * k, axis=1, keepdims=True)
    l_neg = moco_l_neg(q.astype(jnp.bfloat16), memory,
                       temperature=temperature, use_softmax=True,
                       bias=jnp.float32(0.0))
    return jnp.concatenate([l_pos / temperature, l_neg], axis=1)


# ----------------------------------------------------------------------------
# Queue update: in-place donated write.
#   Non-wrapping case -> contiguous dynamic_update_slice (one DMA-able write).
#   Wrapping case     -> scatter fallback (rare: once per pass over the queue).
# ----------------------------------------------------------------------------
@functools.partial(jax.jit, donate_argnums=0)
def _queue_update_slice(memory, k_new, start):
    return jax.lax.dynamic_update_slice(
        memory, k_new.astype(memory.dtype), (start, jnp.int32(0)))


@functools.partial(jax.jit, donate_argnums=0)
def _queue_update_scatter(memory, k_new, start):
    K = memory.shape[0]
    B = k_new.shape[0]
    ids = (jnp.arange(B, dtype=jnp.int32) + start) % K
    return memory.at[ids].set(k_new.astype(memory.dtype))


# ----------------------------------------------------------------------------
# JAX/Pallas re-implementation of the PyTorch MemoryMoCo module.
# ----------------------------------------------------------------------------
class MemoryMoCoJax:

    def __init__(self, inputSize, outputSize, K, T=0.07, use_softmax=False,
                 key=None):
        self.inputSize = inputSize
        self.outputSize = outputSize
        self.queueSize = K
        self.T = T
        self.use_softmax = use_softmax
        self.index = 0
        self.Z = -1.0  # `params` buffer; negative means "not yet set"

        if key is None:
            key = jax.random.PRNGKey(0)
        stdv = 1.0 / math.sqrt(inputSize / 3.0)
        # torch.rand(K, D).mul_(2*stdv).add_(-stdv)  ==  Uniform(-stdv, stdv)
        # Stored in bf16: the kernel streams the bank at half the HBM bytes and
        # accumulates in f32 on the MXU (intentional precision trade-off vs the
        # f32 torch buffer).
        self.memory = jax.random.uniform(
            key, (self.queueSize, inputSize), dtype=jnp.float32,
            minval=-stdv, maxval=stdv).astype(jnp.bfloat16)
        print('using queue shape: ({},{})'.format(self.queueSize, inputSize))

    def forward(self, q, k):
        batchSize = q.shape[0]
        assert batchSize <= self.queueSize, \
            "batch larger than queue (index_copy semantics differ)"
        q = q.astype(jnp.float32)
        k = jax.lax.stop_gradient(k.astype(jnp.float32))   # k.detach()

        if self.use_softmax:
            out = _forward_softmax(q, k, self.memory, temperature=self.T)
        else:
            if self.Z < 0:
                # First call reproduces torch exactly: Z=1 (bias=0), then set Z
                # from the batch and divide.
                # TODO(synk): mirrors torch's params[0].item() -- a host sync +
                # Python-side stateful branch; it blocks the device once.
                raw = _forward_nce(q, k, self.memory, jnp.float32(0.0),
                                   temperature=self.T)
                self.Z = float(jnp.mean(raw) * self.outputSize)
                print('normalization constant Z is set to {:.1f}'.format(self.Z))
                out = raw / self.Z
            else:
                bias = jnp.float32(-math.log(self.Z))   # folded into the kernel
                out = _forward_nce(q, k, self.memory, bias, temperature=self.T)

        out = jnp.squeeze(out)   # matches torch .squeeze() (drops dims if B==1)

        # Queue update: memory.index_copy_(0, (arange(B)+index) % K, k),
        # in place via buffer donation.  Contiguous slice write unless wrapping.
        start = self.index
        if start + batchSize <= self.queueSize:
            self.memory = _queue_update_slice(self.memory, k, jnp.int32(start))
        else:
            self.memory = _queue_update_scatter(self.memory, k, jnp.int32(start))
        self.index = (self.index + batchSize) % self.queueSize

        return out


if __name__ == "__main__":
    # Small, MoCo-consistent shapes: batch=8, feature dim 128 (lane aligned),
    # queue of 512 negatives, "dataset size" outputSize=4096.
    B, D, K_queue, outputSize = 8, 128, 512, 4096

    key = jax.random.PRNGKey(0)
    k_mem, k_q, k_k, k_q2, k_k2, k_q3, k_k3 = jax.random.split(key, 7)

    def _unit(key_, shape):
        x = jax.random.normal(key_, shape, dtype=jnp.float32)
        return x / jnp.linalg.norm(x, axis=1, keepdims=True)

    q = _unit(k_q, (B, D))
    kk = _unit(k_k, (B, D))

    # ---------------- NCE (use_softmax=False) path ----------------
    moco = MemoryMoCoJax(inputSize=D, outputSize=outputSize, K=K_queue,
                         T=0.07, use_softmax=False, key=k_mem)
    mem_before = jnp.copy(moco.memory)          # copy: the bank gets donated

    out = jax.block_until_ready(moco.forward(q, kk))

    # Reference in plain JAX (same math; q rounded to bf16 like the kernel).
    q_bf = q.astype(jnp.bfloat16).astype(jnp.float32)
    mem_f = mem_before.astype(jnp.float32)
    l_pos_ref = jnp.sum(q * kk, axis=1, keepdims=True)
    l_neg_ref = jnp.dot(q_bf, mem_f.T, precision=jax.lax.Precision.HIGHEST)
    logits_ref = jnp.concatenate([l_pos_ref, l_neg_ref], axis=1) / moco.T
    ref = jnp.exp(logits_ref) / moco.Z
    assert out.shape == (B, 1 + K_queue)
    assert jnp.allclose(out, ref, rtol=2e-3, atol=1e-6), \
        float(jnp.max(jnp.abs(out - ref)))

    # Queue got updated with k (cast to bf16) at the right slots, in place.
    assert jnp.allclose(moco.memory[:B].astype(jnp.float32),
                        kk.astype(jnp.bfloat16).astype(jnp.float32))
    assert moco.index == B

    # ---- Second NCE call exercises the folded -ln(Z) bias fast path. ----
    mem_mid = jnp.copy(moco.memory)
    q3 = _unit(k_q3, (B, D))
    k3 = _unit(k_k3, (B, D))
    out3 = jax.block_until_ready(moco.forward(q3, k3))
    q3_bf = q3.astype(jnp.bfloat16).astype(jnp.float32)
    ref3 = jnp.exp(jnp.concatenate(
        [jnp.sum(q3 * k3, axis=1, keepdims=True),
         jnp.dot(q3_bf, mem_mid.astype(jnp.float32).T,
                 precision=jax.lax.Precision.HIGHEST)], axis=1) / moco.T) / moco.Z
    assert out3.shape == (B, 1 + K_queue)
    assert jnp.allclose(out3, ref3, rtol=2e-3, atol=1e-6), \
        float(jnp.max(jnp.abs(out3 - ref3)))
    assert moco.index == 2 * B

    # ---------------- softmax (use_softmax=True) path ----------------
    moco_sm = MemoryMoCoJax(inputSize=D, outputSize=outputSize, K=K_queue,
                            T=0.07, use_softmax=True, key=k_mem)
    mem_before2 = jnp.copy(moco_sm.memory)
    q2 = _unit(k_q2, (B, D))
    k2 = _unit(k_k2, (B, D))

    out2 = jax.block_until_ready(moco_sm.forward(q2, k2))

    q2_bf = q2.astype(jnp.bfloat16).astype(jnp.float32)
    ref2 = jnp.concatenate(
        [jnp.sum(q2 * k2, axis=1, keepdims=True),
         jnp.dot(q2_bf, mem_before2.astype(jnp.float32).T,
                 precision=jax.lax.Precision.HIGHEST)], axis=1) / moco_sm.T
    assert out2.shape == (B, 1 + K_queue)
    assert jnp.allclose(out2, ref2, rtol=2e-3, atol=1e-5)

    # ---------------- wrap-around queue-update path ----------------
    mem_small = jnp.arange(16 * 4, dtype=jnp.float32).reshape(16, 4)
    new_rows = -jnp.ones((8, 4), jnp.float32)
    wrapped = _queue_update_scatter(mem_small, new_rows, jnp.int32(12))
    expect = jnp.arange(16 * 4, dtype=jnp.float32).reshape(16, 4)
    expect = expect.at[12:].set(-1.0).at[:4].set(-1.0)
    assert jnp.allclose(wrapped, expect)

    print("KERNEL_OK")
</pallas_src>

<mosaic_0001>
module attributes {stable_mosaic.version = 11 : i64} {
  func.func @_lneg_kernel(%arg0: i32, %arg1: memref<1xf32, #tpu.memory_space<smem>>, %arg2: memref<8x128xbf16, #tpu.memory_space<vmem>>, %arg3: memref<512x128xbf16, #tpu.memory_space<vmem>>, %arg4: memref<8x512xf32, #tpu.memory_space<vmem>>) attributes {dimension_semantics = [#tpu.dimension_semantics<parallel>], iteration_bounds = array<i64: 1>, scalar_prefetch = 0 : i64, scratch_operands = 0 : i64, tpu.core_type = #tpu.core_type<tc>, window_params = [{transform_indices = @transform_0, window_bounds = array<i64: 1>}, {pipeline_mode = #tpu.pipeline_mode<synchronous>, transform_indices = @transform_1, window_bounds = array<i64: 8, 128>}, {transform_indices = @transform_2, window_bounds = array<i64: 512, 128>}, {transform_indices = @transform_3, window_bounds = array<i64: 8, 512>}]} {
    %c0 = arith.constant 0 : index
    %c0_0 = arith.constant 0 : index
    %0 = vector.load %arg2[%c0, %c0_0] : memref<8x128xbf16, #tpu.memory_space<vmem>>, vector<8x128xbf16>
    %c0_1 = arith.constant 0 : index
    %c0_2 = arith.constant 0 : index
    %1 = vector.load %arg3[%c0_1, %c0_2] : memref<512x128xbf16, #tpu.memory_space<vmem>>, vector<512x128xbf16>
    %cst = arith.constant dense<0.000000e+00> : vector<8x512xf32>
    %2 = tpu.matmul %0, %1, %cst {dimension_numbers = #tpu.dot_dimension_numbers<[1], [1], [0], [0], [0, 0, 1, 0], [], []>} : vector<8x128xbf16>, vector<512x128xbf16>, vector<8x512xf32> -> vector<8x512xf32>
    %cst_3 = arith.constant 14.2857141 : f32
    %3 = vector.broadcast %cst_3 : f32 to vector<8x512xf32>
    %4 = arith.mulf %2, %3 : vector<8x512xf32>
    %c0_4 = arith.constant 0 : index
    %5 = memref.load %arg1[%c0_4] : memref<1xf32, #tpu.memory_space<smem>>
    %6 = vector.broadcast %5 : f32 to vector<8x512xf32>
    %7 = arith.addf %4, %6 : vector<8x512xf32>
    %8 = math.exp %7 : vector<8x512xf32>
    %c0_5 = arith.constant 0 : index
    %c0_6 = arith.constant 0 : index
    %9 = vector.load %arg4[%c0_5, %c0_6] : memref<8x512xf32, #tpu.memory_space<vmem>>, vector<8x512xf32>
    tpu.vector_store %arg4[%c0_5, %c0_6], %8 {strides = array<i32>} : memref<8x512xf32, #tpu.memory_space<vmem>>, vector<8x512xf32>,
    return
  }
  func.func @transform_0(%arg0: i32) -> i32 {
    %c0_i32 = arith.constant 0 : i32
    %c0_i32_0 = arith.constant 0 : i32
    return %c0_i32 : i32
  }
  func.func @transform_1(%arg0: i32) -> (i32, i32) {
    %c0_i32 = arith.constant 0 : i32
    %c0_i32_0 = arith.constant 0 : i32
    %c0_i32_1 = arith.constant 0 : i32
    return %c0_i32, %c0_i32_0 : i32, i32
  }
  func.func @transform_2(%arg0: i32) -> (i32, i32) {
    %c0_i32 = arith.constant 0 : i32
    %c0_i32_0 = arith.constant 0 : i32
    return %arg0, %c0_i32 : i32, i32
  }
  func.func @transform_3(%arg0: i32) -> (i32, i32) {
    %c0_i32 = arith.constant 0 : i32
    %c0_i32_0 = arith.constant 0 : i32
    return %c0_i32, %arg0 : i32, i32
  }
}

</mosaic_0001>

<bundles_post_ra>
// kernel: _forward_nce.1
= control target key start
LH: loop header
LB: loop body
LE: loop exit
PB: predicated region body
PF: predicated region fallthrough
CT: control target
= control target key end

     0   :  { %9 = vsyncpa [#allocation4], 0  ;;  %s564_s15 = smov [#allocation3]   ;;  %s565_s17 = smov 64   ;;  %s608_s0 = inlined_call_operand.<no memory space> [shape: f32[1], index: 0, kind: input, shape index: {}]   ;;  %s609_s1 = inlined_call_operand.vmem [shape: bf16[8,128], index: 1, kind: input, shape index: {}]   ;;  %s610_s2 = inlined_call_operand.hbm [shape: bf16[512,128], index: 2, kind: input, shape index: {}]   ;;  %s611_s3 = inlined_call_operand.vmem [shape: f32[8,512], index: 3, kind: output, shape index: {}]  }
   0x1   :  { %s18_s14 = sshll.u32 %s610_s2, 4  ;;  %s20_s16 = sshll.u32 %s564_s15, 4  ;;  %s19_s14 = int_to_ptr.hbm [resolvable:$true] %s18_s14  ;;  %s21_s16 = int_to_ptr.vmem [resolvable:$true] %s20_s16 }
   0x2   :  { %s566_s18 = smov 4  }
   0x3   :  { %26 = dma.hbm_to_vmem [thread:$0]  %s19_s14, 4096, %s21_s16, [#allocation4], %s565_s17, %s565_s17, %s566_s18  }
   0x4   :  { %562 = dma.done.wait [#allocation4], 4096  }
   0x5   :  { %563 = vsyncadd [#allocation4], 4294963200  ;;  %v502_v0 = vld [vmem:[#allocation3 + $0x38] sm:$0xff]  ;;  %v501_v4 = vld [vmem:[#allocation3 + $0x30] sm:$0xff]  ;;  %v345_v34 = vstv %s608_s0 }
   0x6   :  { %v510_v1 = vld [vmem:[#allocation3 + $0x78] sm:$0xff]  ;;  %288 = vmatpush.bf16.xpose.msra.mxu0 %v502_v0  ;;  %v509_v5 = vld [vmem:[#allocation3 + $0x70] sm:$0xff]  ;;  %v500_v8 = vld [vmem:[#allocation3 + $0x28] sm:$0xff] }
   0x7   :  { %v518_v2 = vld [vmem:[#allocation3 + $0xb8] sm:$0xff]  ;;  %301 = vmatpush.bf16.xpose.msra.mxu1 %v510_v1  ;;  %v517_v6 = vld [vmem:[#allocation3 + $0xb0] sm:$0xff]  ;;  %v508_v9 = vld [vmem:[#allocation3 + $0x68] sm:$0xff] }
   0x8   :  { %v526_v3 = vld [vmem:[#allocation3 + $0xf8] sm:$0xff]  ;;  %314 = vmatpush.bf16.xpose.msra.mxu2 %v518_v2  ;;  %v525_v7 = vld [vmem:[#allocation3 + $0xf0] sm:$0xff]  ;;  %v516_v10 = vld [vmem:[#allocation3 + $0xa8] sm:$0xff] }
   0x9   :  { %327 = vmatpush.bf16.xpose.msra.mxu3 %v526_v3  ;;  %v524_v11 = vld [vmem:[#allocation3 + $0xe8] sm:$0xff]  ;;  %v499_v12 = vld [vmem:[#allocation3 + $0x20] sm:$0xff]  ;;  %v498_v16 = vld [vmem:[#allocation3 + $0x18] sm:$0xff] }
   0xa   :  { %v507_v13 = vld [vmem:[#allocation3 + $0x60] sm:$0xff]  ;;  %v506_v17 = vld [vmem:[#allocation3 + $0x58] sm:$0xff]  ;;  %v497_v20 = vld [vmem:[#allocation3 + $0x10] sm:$0xff] }
   0xb   :  { %v515_v14 = vld [vmem:[#allocation3 + $0xa0] sm:$0xff]  ;;  %v514_v18 = vld [vmem:[#allocation3 + $0x98] sm:$0xff]  ;;  %v505_v21 = vld [vmem:[#allocation3 + $0x50] sm:$0xff] }
   0xc   :  { %v523_v15 = vld [vmem:[#allocation3 + $0xe0] sm:$0xff]  ;;  %v522_v19 = vld [vmem:[#allocation3 + $0xd8] sm:$0xff]  ;;  %v513_v22 = vld [vmem:[#allocation3 + $0x90] sm:$0xff] }
   0xd   :  { %v521_v23 = vld [vmem:[#allocation3 + $0xd0] sm:$0xff]  ;;  %v496_v24 = vld [vmem:[#allocation3 + $0x8] sm:$0xff]  ;;  %v495_v28 = vld [vmem:[#allocation3] sm:$0xff] }
   0xe   :  { %289 = vmatpush.bf16.xpose.msra.mxu0 %v501_v4  ;;  %v504_v25 = vld [vmem:[#allocation3 + $0x48] sm:$0xff]  ;;  %v503_v29 = vld [vmem:[#allocation3 + $0x40] sm:$0xff] }
   0xf   :  { %302 = vmatpush.bf16.xpose.msra.mxu1 %v509_v5  ;;  %v512_v26 = vld [vmem:[#allocation3 + $0x88] sm:$0xff]  ;;  %v511_v30 = vld [vmem:[#allocation3 + $0x80] sm:$0xff] }
  0x10   :  { %315 = vmatpush.bf16.xpose.msra.mxu2 %v517_v6  ;;  %v520_v27 = vld [vmem:[#allocation3 + $0xc8] sm:$0xff]  ;;  %v519_v31 = vld [vmem:[#allocation3 + $0xc0] sm:$0xff] }
  0x11   :  { %328 = vmatpush.bf16.xpose.msra.mxu3 %v525_v7  ;;  %v31_v32 = vld [vmem:[%s609_s1] sm:$0xf] }
  0x16   :  { %290 = vmatpush.bf16.xpose.msra.mxu0 %v500_v8 }
  0x17   :  { %303 = vmatpush.bf16.xpose.msra.mxu1 %v508_v9 }
  0x18   :  { %316 = vmatpush.bf16.xpose.msra.mxu2 %v516_v10 }
  0x19   :  { %329 = vmatpush.bf16.xpose.msra.mxu3 %v524_v11 }
  0x1e   :  { %291 = vmatpush.bf16.xpose.msra.mxu0 %v499_v12 }
  0x1f   :  { %304 = vmatpush.bf16.xpose.msra.mxu1 %v507_v13 }
  0x20   :  { %317 = vmatpush.bf16.xpose.msra.mxu2 %v515_v14 }
  0x21   :  { %330 = vmatpush.bf16.xpose.msra.mxu3 %v523_v15 }
  0x26   :  { %292 = vmatpush.bf16.xpose.msra.mxu0 %v498_v16 }
  0x27   :  { %305 = vmatpush.bf16.xpose.msra.mxu1 %v506_v17 }
  0x28   :  { %318 = vmatpush.bf16.xpose.msra.mxu2 %v514_v18 }
  0x29   :  { %331 = vmatpush.bf16.xpose.msra.mxu3 %v522_v19 }
  0x2e   :  { %293 = vmatpush.bf16.xpose.msra.mxu0 %v497_v20 }
  0x2f   :  { %306 = vmatpush.bf16.xpose.msra.mxu1 %v505_v21 }
  0x30   :  { %319 = vmatpush.bf16.xpose.msra.mxu2 %v513_v22 }
  0x31   :  { %332 = vmatpush.bf16.xpose.msra.mxu3 %v521_v23 }
  0x36   :  { %294 = vmatpush.bf16.xpose.msra.mxu0 %v496_v24 }
  0x37   :  { %307 = vmatpush.bf16.xpose.msra.mxu1 %v504_v25 }
  0x38   :  { %320 = vmatpush.bf16.xpose.msra.mxu2 %v512_v26 }
  0x39   :  { %333 = vmatpush.bf16.xpose.msra.mxu3 %v520_v27 }
  0x3e   :  { %295 = vmatpush.bf16.xpose.msra.mxu0 %v495_v28 }
  0x3f   :  { %308 = vmatpush.bf16.xpose.msra.mxu1 %v503_v29 }
  0x40   :  { %321 = vmatpush.bf16.xpose.msra.mxu2 %v511_v30 }
  0x41   :  { %334 = vmatpush.bf16.xpose.msra.mxu3 %v519_v31 }
  0x45   :  { %296 = vmatmul.bf16.vlgmr.msra.gmra.mxu0 %v31_v32 }
  0x46   :  { %309 = vmatmul.bf16.vlgmr.msra.gmra.mxu1 %v31_v32 }
  0x47   :  { %322 = vmatmul.bf16.vlgmr.msra.gmra.mxu2 %v31_v32 }
  0x48   :  { %335 = vmatmul.bf16.vlgmr.msra.gmra.mxu3 %v31_v32 }
  0xc2   :  { %v297_v33 = vpop.f32.mrf.mxu0 }
  0xc3   :  { %v310_v35 = vpop.f32.mrf.mxu1  ;;  %v340_v36 = vmul.f32 14.285714, %v297_v33 }
  0xc4   :  { %v341_v37 = vmul.f32 14.285714, %v310_v35 }
  0xc5   :  { %v346_v38 = vadd.f32 %v345_v34, %v340_v36 }
  0xc6   :  { %v347_v39 = vadd.f32 %v345_v34, %v341_v37 }
  0xc7   :  { %v350_v40 = vmul.f32 1.442695, %v346_v38 }
  0xc8   :  { %v352_v41 = vmul.f32 1.442695, %v347_v39 }
  0xc9   :  { %530 = vpow2.f32 %v350_v40 }
  0xca   :  { %v323_v42 = vpop.f32.mrf.mxu2  ;;  %532 = vpow2.f32 %v352_v41  ;;  %v299_v46 = vpop.f32.mrf.mxu0 }
  0xcb   :  { %v336_v43 = vpop.f32.mrf.mxu3  ;;  %v342_v44 = vmul.f32 14.285714, %v323_v42  ;;  %v312_v47 = vpop.f32.mrf.mxu1 }
  0xcc   :  { %v343_v45 = vmul.f32 14.285714, %v336_v43 }
  0xcd   :  { %v348_v48 = vadd.f32 %v345_v34, %v342_v44 }
  0xce   :  { %v349_v49 = vadd.f32 %v345_v34, %v343_v45 }
  0xcf   :  { %v354_v50 = vmul.f32 1.442695, %v348_v48  ;;  %v531_v52 = vpop.eup %530 }
  0xd0   :  { %v356_v51 = vmul.f32 1.442695, %v349_v49  ;;  %v533_v53 = vpop.eup %532  ;;  %358 = vst [vmem:[%s611_s3] sm:$0xff] %v531_v52 }
  0xd1   :  { %534 = vpow2.f32 %v354_v50  ;;  %359 = vst [vmem:[%s611_s3 + $0x8] sm:$0xff] %v533_v53 }
  0xd2   :  { %536 = vpow2.f32 %v356_v51  ;;  %v325_v54 = vpop.f32.mrf.mxu2 }
  0xd3   :  { %v338_v55 = vpop.f32.mrf.mxu3 }
  0xd7   :  { %v535_v56 = vpop.eup %534 }
  0xd8   :  { %v537_v57 = vpop.eup %536  ;;  %360 = vst [vmem:[%s611_s3 + $0x10] sm:$0xff] %v535_v56 }
  0xd9   :  { %361 = vst [vmem:[%s611_s3 + $0x18] sm:$0xff] %v537_v57 }
  0xda   :  { %366 = vsyncpa [#allocation4], 1 }

</bundles_post_ra>
